<compile_context>
chip_gen: v6e
topology: v6e:2x2x1
jax: 0.10.0
libtpu: 0.0.40
codegen_flags: <defaults>
</compile_context>

<pallas_src>
import jax
import jax.numpy as jnp
from jax import lax
from jax.experimental import pallas as pl
from jax.experimental.pallas import tpu as pltpu

EPS = 1e-3
_ROW_ALIGN = 8
_LANE_ALIGN = 128


# --------------------------------------------------------------------------
# Per-generation configuration
# --------------------------------------------------------------------------
def _tpu_vmem_capacity():
    try:
        info = pltpu.get_tpu_info()
        cap = getattr(info, "vmem_capacity_bytes", None)
        if cap:
            return int(cap)
    except Exception:
        pass
    return 64 * 1024 * 1024  # conservative (v7x-sized) fallback


def _gen_config():
    cap = _tpu_vmem_capacity()
    if cap >= 100 * 1024 * 1024:
        # v5e / v6e: 128 MiB physical VMEM -> larger tiles, fewer grid steps.
        return dict(row_target=512, lane_target=4096,
                    vmem_limit=96 * 1024 * 1024,
                    fused_budget=80 * 1024 * 1024)
    # v7x: 64 MiB physical VMEM per TensorCore -> keep footprint well under it.
    return dict(row_target=256, lane_target=2048,
                vmem_limit=48 * 1024 * 1024,
                fused_budget=40 * 1024 * 1024)


# --------------------------------------------------------------------------
# Tiling helpers (cdiv grids + masking; no full-extent fallback hazards)
# --------------------------------------------------------------------------
def _round_up(x, m):
    return -(-x // m) * m


def _row_tile(R, target):
    target = max(_ROW_ALIGN, (target // _ROW_ALIGN) * _ROW_ALIGN)
    if R < 2 * _ROW_ALIGN:
        return R  # cannot split into two 8-aligned blocks; single full block
    # Cap so the 'parallel' row axis gets >= 2 blocks (v7x megacore sharding).
    half = _round_up((R + 1) // 2, _ROW_ALIGN)
    return min(target, half)


def _lane_tile(L, target):
    target = max(_LANE_ALIGN, (target // _LANE_ALIGN) * _LANE_ALIGN)
    return L if L <= target else target


# --------------------------------------------------------------------------
# Fused single-pass path (activation resident in VMEM)
# --------------------------------------------------------------------------
def _fused_kernel(x_ref, p_ref, o_ref):
    # x_ref: (N, C, L); p_ref: (3, C, 1) packed [gamma, beta, alpha].
    x = x_ref[...].astype(jnp.float32)
    cnt = jnp.float32(x.shape[0] * x.shape[2])
    s = jnp.sum(jnp.sum(x, axis=2, keepdims=True), axis=0, keepdims=True)
    mean = s / cnt                                             # (1, C, 1)
    d = x - mean
    var = jnp.sum(jnp.sum(d * d, axis=2, keepdims=True), axis=0,
                  keepdims=True) / cnt                         # centered: exact
    p = p_ref[...]
    scale = p[0:1] * lax.rsqrt(var + EPS)                      # gamma * inv_std
    y = d * scale + p[1:2]                                     # + beta
    o_ref[...] = jnp.where(y > 0, y, p[2:3] * y).astype(o_ref.dtype)


def _bnprelu_fused(x_nchw, gamma, beta, alpha, vmem_limit):
    n, c, h, w = x_nchw.shape
    L = h * w
    x3 = x_nchw.reshape(n, c, L)
    params = jnp.stack([gamma, beta, alpha]).astype(jnp.float32).reshape(3, c, 1)
    out3 = pl.pallas_call(
        _fused_kernel,
        out_shape=jax.ShapeDtypeStruct((n, c, L), x_nchw.dtype),
        grid_spec=pl.GridSpec(
            grid=(1,),
            in_specs=[pl.BlockSpec((n, c, L), lambda i: (0, 0, 0)),
                      pl.BlockSpec((3, c, 1), lambda i: (0, 0, 0))],
            out_specs=pl.BlockSpec((n, c, L), lambda i: (0, 0, 0)),
        ),
        compiler_params=pltpu.CompilerParams(
            dimension_semantics=("arbitrary",),
            vmem_limit_bytes=vmem_limit),
    )(x3, params)
    return out3.reshape(n, c, h, w)


# --------------------------------------------------------------------------
# Streaming two-pass path
# --------------------------------------------------------------------------
def _make_stats_kernel(L, tl):
    ragged = (L % tl) != 0

    def kernel(x_ref, stat_ref):
        @pl.when(pl.program_id(1) == 0)
        def _():
            stat_ref[...] = jnp.zeros_like(stat_ref)

        x = x_ref[...].astype(jnp.float32)
        if ragged:
            base = pl.program_id(1) * tl
            lane = lax.broadcasted_iota(jnp.int32, x.shape, 1)
            x = jnp.where(base + lane < L, x, 0.0)
        stat_ref[:, 0:1] += jnp.sum(x, axis=-1, keepdims=True)
        stat_ref[:, 1:2] += jnp.sum(x * x, axis=-1, keepdims=True)

    return kernel


def _apply_kernel(x_ref, p_ref, o_ref):
    # p_ref: (tr, 3) packed per-row [scale, shift, alpha].
    x = x_ref[...].astype(jnp.float32)
    p = p_ref[...]
    y = x * p[:, 0:1] + p[:, 1:2]
    o_ref[...] = jnp.where(y > 0, y, p[:, 2:3] * y).astype(o_ref.dtype)


def _bnprelu_streaming(x_nchw, gamma, beta, alpha, *,
                       row_target, lane_target, vmem_limit):
    n, c, h, w = x_nchw.shape
    L = h * w
    R = n * c

    # Free row-major reshape (no HBM data movement): NCHW -> (N*C, H*W).
    x2 = x_nchw.reshape(R, L)

    tr = _row_tile(R, row_target)
    tl = _lane_tile(L, lane_target)
    grid = (pl.cdiv(R, tr), pl.cdiv(L, tl))

    # ---- Phase 1: per-row [sum, sumsq] into a single (R, 2) accumulator ----
    stats = pl.pallas_call(
        _make_stats_kernel(L, tl),
        out_shape=jax.ShapeDtypeStruct((R, 2), jnp.float32),
        grid_spec=pl.GridSpec(
            grid=grid,
            in_specs=[pl.BlockSpec((tr, tl), lambda i, j: (i, j))],
            out_specs=pl.BlockSpec((tr, 2), lambda i, j: (i, 0)),
        ),
        compiler_params=pltpu.CompilerParams(
            dimension_semantics=("parallel", "arbitrary"),
            vmem_limit_bytes=vmem_limit),
    )(x2)

    # ---- Tiny O(C) math: fold BN into per-channel scale/shift --------------
    # TODO(synk): E[x^2]-E[x]^2 can cancel for |mean| >> std inputs; a shifted
    # sum-of-squares accumulation would be needed for such data. Clamped at 0.
    count = jnp.float32(n * L)
    ch_sum = stats[:, 0].reshape(n, c).sum(axis=0)
    ch_sq = stats[:, 1].reshape(n, c).sum(axis=0)
    mean = ch_sum / count
    var = jnp.maximum(ch_sq / count - mean * mean, 0.0)   # biased var (training BN)
    inv_std = lax.rsqrt(var + EPS)
    scale = gamma.astype(jnp.float32) * inv_std
    shift = beta.astype(jnp.float32) - mean * scale
    params_c = jnp.stack([scale, shift, alpha.astype(jnp.float32)], axis=-1)  # (C,3)
    params_r = jnp.tile(params_c, (n, 1))                                      # (R,3)

    # ---- Phase 2: apply y = x*scale + shift ; PReLU -------------------------
    out2 = pl.pallas_call(
        _apply_kernel,
        out_shape=jax.ShapeDtypeStruct((R, L), x_nchw.dtype),
        grid_spec=pl.GridSpec(
            grid=grid,
            in_specs=[pl.BlockSpec((tr, tl), lambda i, j: (i, j)),
                      pl.BlockSpec((tr, 3), lambda i, j: (i, 0))],
            out_specs=pl.BlockSpec((tr, tl), lambda i, j: (i, j)),
        ),
        compiler_params=pltpu.CompilerParams(
            dimension_semantics=("parallel", "parallel"),
            vmem_limit_bytes=vmem_limit),
    )(x2, params_r)

    return out2.reshape(n, c, h, w)


# --------------------------------------------------------------------------
# Public entry point
# --------------------------------------------------------------------------
def bnprelu(x_nchw, gamma, beta, alpha):
    """x_nchw: (N, C, H, W). gamma/beta/alpha: (C,). Training-mode BN + PReLU."""
    # TODO(synk): small-spatial layers (H*W < 128) under-fill vreg lanes in the
    # streaming path; a (C, N*H*W) packing would need a real transpose.
    n, c, h, w = x_nchw.shape
    cfg = _gen_config()
    f32_bytes = n * c * h * w * 4
    if 4 * f32_bytes <= cfg["fused_budget"]:
        return _bnprelu_fused(x_nchw, gamma, beta, alpha, cfg["vmem_limit"])
    return _bnprelu_streaming(x_nchw, gamma, beta, alpha,
                              row_target=cfg["row_target"],
                              lane_target=cfg["lane_target"],
                              vmem_limit=cfg["vmem_limit"])


def bnprelu_ref(x_nchw, gamma, beta, alpha):
    # Pure-JAX reference (training-mode BN + PReLU) for verification.
    mean = jnp.mean(x_nchw, axis=(0, 2, 3), keepdims=True)
    var = jnp.mean((x_nchw - mean) ** 2, axis=(0, 2, 3), keepdims=True)
    y = (x_nchw - mean) * lax.rsqrt(var + EPS)
    y = y * gamma.reshape(1, -1, 1, 1) + beta.reshape(1, -1, 1, 1)
    a = alpha.reshape(1, -1, 1, 1)
    return jnp.where(y > 0, y, a * y)


if __name__ == "__main__":
    key = jax.random.PRNGKey(0)

    # --- Primary check: fused single-pass path (small activation) ----------
    N, C, H, W = 2, 4, 16, 16
    k0, k1 = jax.random.split(key)
    x = jax.random.normal(k0, (N, C, H, W), dtype=jnp.float32)
    gamma = jnp.ones((C,), jnp.float32)          # BatchNorm2d weight
    beta = jnp.zeros((C,), jnp.float32)          # BatchNorm2d bias
    alpha = jnp.full((C,), 0.25, jnp.float32)    # PReLU slope

    out = jax.block_until_ready(bnprelu(x, gamma, beta, alpha))
    ref = bnprelu_ref(x, gamma, beta, alpha)
    assert out.shape == (N, C, H, W)
    assert jnp.allclose(out, ref, atol=1e-4, rtol=1e-4)

    # --- Coverage check: streaming two-pass path with ragged row/lane tiles -
    N2, C2, H2, W2 = 2, 9, 16, 15                # R=18 (ragged rows), L=240 (ragged lanes)
    x2 = jax.random.normal(k1, (N2, C2, H2, W2), dtype=jnp.float32)
    gamma2 = jnp.ones((C2,), jnp.float32)
    beta2 = jnp.zeros((C2,), jnp.float32)
    alpha2 = jnp.full((C2,), 0.25, jnp.float32)

    out2 = jax.block_until_ready(
        _bnprelu_streaming(x2, gamma2, beta2, alpha2,
                           row_target=8, lane_target=128,
                           vmem_limit=32 * 1024 * 1024))
    ref2 = bnprelu_ref(x2, gamma2, beta2, alpha2)
    assert out2.shape == (N2, C2, H2, W2)
    assert jnp.allclose(out2, ref2, atol=1e-4, rtol=1e-4)

    print("KERNEL_OK")
</pallas_src>

<mosaic_0001>
module attributes {stable_mosaic.version = 11 : i64} {
  func.func @_fused_kernel(%arg0: i32, %arg1: memref<2x4x256xf32, #tpu.memory_space<vmem>>, %arg2: memref<3x4x1xf32, #tpu.memory_space<vmem>>, %arg3: memref<2x4x256xf32, #tpu.memory_space<vmem>>) attributes {dimension_semantics = [#tpu.dimension_semantics<arbitrary>], iteration_bounds = array<i64: 1>, scalar_prefetch = 0 : i64, scratch_operands = 0 : i64, tpu.core_type = #tpu.core_type<tc>, window_params = [{pipeline_mode = #tpu.pipeline_mode<synchronous>, transform_indices = @transform_0, window_bounds = array<i64: 2, 4, 256>}, {pipeline_mode = #tpu.pipeline_mode<synchronous>, transform_indices = @transform_1, window_bounds = array<i64: 3, 4, 1>}, {pipeline_mode = #tpu.pipeline_mode<synchronous>, transform_indices = @transform_2, window_bounds = array<i64: 2, 4, 256>}]} {
    %c0 = arith.constant 0 : index
    %c0_0 = arith.constant 0 : index
    %c0_1 = arith.constant 0 : index
    %0 = vector.load %arg1[%c0, %c0_0, %c0_1] : memref<2x4x256xf32, #tpu.memory_space<vmem>>, vector<2x4x256xf32>
    %cst = arith.constant dense<0.000000e+00> : vector<2x4xf32>
    %1 = vector.multi_reduction <add>, %0, %cst [2] : vector<2x4x256xf32> to vector<2x4xf32>
    %2 = vector.shape_cast %1 : vector<2x4xf32> to vector<2x4x1xf32>
    %cst_2 = arith.constant dense<0.000000e+00> : vector<4x1xf32>
    %3 = vector.multi_reduction <add>, %2, %cst_2 [0] : vector<2x4x1xf32> to vector<4x1xf32>
    %4 = vector.shape_cast %3 : vector<4x1xf32> to vector<1x4x1xf32>
    %cst_3 = arith.constant 5.120000e+02 : f32
    %5 = vector.broadcast %cst_3 : f32 to vector<1x4x1xf32>
    %6 = arith.divf %4, %5 : vector<1x4x1xf32>
    %7 = vector.broadcast %6 : vector<1x4x1xf32> to vector<2x4x256xf32>
    %8 = arith.subf %0, %7 : vector<2x4x256xf32>
    %9 = arith.mulf %8, %8 : vector<2x4x256xf32>
    %cst_4 = arith.constant dense<0.000000e+00> : vector<2x4xf32>
    %10 = vector.multi_reduction <add>, %9, %cst_4 [2] : vector<2x4x256xf32> to vector<2x4xf32>
    %11 = vector.shape_cast %10 : vector<2x4xf32> to vector<2x4x1xf32>
    %cst_5 = arith.constant dense<0.000000e+00> : vector<4x1xf32>
    %12 = vector.multi_reduction <add>, %11, %cst_5 [0] : vector<2x4x1xf32> to vector<4x1xf32>
    %13 = vector.shape_cast %12 : vector<4x1xf32> to vector<1x4x1xf32>
    %cst_6 = arith.constant 5.120000e+02 : f32
    %14 = vector.broadcast %cst_6 : f32 to vector<1x4x1xf32>
    %15 = arith.divf %13, %14 : vector<1x4x1xf32>
    %c0_7 = arith.constant 0 : index
    %c0_8 = arith.constant 0 : index
    %c0_9 = arith.constant 0 : index
    %16 = vector.load %arg2[%c0_7, %c0_8, %c0_9] : memref<3x4x1xf32, #tpu.memory_space<vmem>>, vector<3x4x1xf32>
    %17 = vector.extract_strided_slice %16 {offsets = [0, 0, 0], sizes = [1, 4, 1], strides = [1, 1, 1]} : vector<3x4x1xf32> to vector<1x4x1xf32>
    %cst_10 = arith.constant 1.000000e-03 : f32
    %18 = vector.broadcast %cst_10 : f32 to vector<1x4x1xf32>
    %19 = arith.addf %15, %18 : vector<1x4x1xf32>
    %20 = math.rsqrt %19 : vector<1x4x1xf32>
    %21 = arith.mulf %17, %20 : vector<1x4x1xf32>
    %22 = vector.broadcast %21 : vector<1x4x1xf32> to vector<2x4x256xf32>
    %23 = arith.mulf %8, %22 : vector<2x4x256xf32>
    %24 = vector.extract_strided_slice %16 {offsets = [1, 0, 0], sizes = [1, 4, 1], strides = [1, 1, 1]} : vector<3x4x1xf32> to vector<1x4x1xf32>
    %25 = vector.broadcast %24 : vector<1x4x1xf32> to vector<2x4x256xf32>
    %26 = arith.addf %23, %25 : vector<2x4x256xf32>
    %cst_11 = arith.constant 0.000000e+00 : f32
    %27 = vector.broadcast %cst_11 : f32 to vector<2x4x256xf32>
    %28 = arith.cmpf ogt, %26, %27 : vector<2x4x256xf32>
    %29 = vector.extract_strided_slice %16 {offsets = [2, 0, 0], sizes = [1, 4, 1], strides = [1, 1, 1]} : vector<3x4x1xf32> to vector<1x4x1xf32>
    %30 = vector.broadcast %29 : vector<1x4x1xf32> to vector<2x4x256xf32>
    %31 = arith.mulf %30, %26 : vector<2x4x256xf32>
    %32 = arith.select %28, %26, %31 : vector<2x4x256xi1>, vector<2x4x256xf32>
    %c0_12 = arith.constant 0 : index
    %c0_13 = arith.constant 0 : index
    %c0_14 = arith.constant 0 : index
    %33 = vector.load %arg3[%c0_12, %c0_13, %c0_14] : memref<2x4x256xf32, #tpu.memory_space<vmem>>, vector<2x4x256xf32>
    tpu.vector_store %arg3[%c0_12, %c0_13, %c0_14], %32 {strides = array<i32>} : memref<2x4x256xf32, #tpu.memory_space<vmem>>, vector<2x4x256xf32>,
    return
  }
  func.func @transform_0(%arg0: i32) -> (i32, i32, i32) {
    %c0_i32 = arith.constant 0 : i32
    %c0_i32_0 = arith.constant 0 : i32
    %c0_i32_1 = arith.constant 0 : i32
    %c0_i32_2 = arith.constant 0 : i32
    return %c0_i32, %c0_i32_0, %c0_i32_1 : i32, i32, i32
  }
  func.func @transform_1(%arg0: i32) -> (i32, i32, i32) {
    %c0_i32 = arith.constant 0 : i32
    %c0_i32_0 = arith.constant 0 : i32
    %c0_i32_1 = arith.constant 0 : i32
    %c0_i32_2 = arith.constant 0 : i32
    return %c0_i32, %c0_i32_0, %c0_i32_1 : i32, i32, i32
  }
  func.func @transform_2(%arg0: i32) -> (i32, i32, i32) {
    %c0_i32 = arith.constant 0 : i32
    %c0_i32_0 = arith.constant 0 : i32
    %c0_i32_1 = arith.constant 0 : i32
    %c0_i32_2 = arith.constant 0 : i32
    return %c0_i32, %c0_i32_0, %c0_i32_1 : i32, i32, i32
  }
}

</mosaic_0001>

<bundles_post_ra>
// kernel: tpu_custom_call.1
= control target key start
LH: loop header
LB: loop body
LE: loop exit
PB: predicated region body
PF: predicated region fallthrough
CT: control target
= control target key end

     0   :  { %7 = vsyncpa [#allocation3], 0  ;;  %s273_s0 = inlined_call_operand.hbm [shape: f32[2,4,256], index: 0, kind: input, shape index: {}]   ;;  %s274_s1 = inlined_call_operand.vmem [shape: f32[3,4,1], index: 1, kind: input, shape index: {}]   ;;  %s275_s2 = inlined_call_operand.hbm [shape: f32[2,4,256], index: 2, kind: output, shape index: {}]  }
   0x1   :  { %8 = vsyncpa [#allocation4], 0  ;;  %s219_s9 = smov [#allocation2]  }
   0x2   :  { %s14_s10 = sshll.u32 %s219_s9, 4  ;;  %s15_s10 = int_to_ptr.vmem [resolvable:$true] %s14_s10 }
   0x3   :  { %s183_s11 = scalar_lea.vmem %s15_s10, 256  ;;  %p188_p1 = scmp.lt.s32.totalorder %s15_s10, %s15_s10 }
   0x4   :  { %p184_p0 = scmp.ne.s32.totalorder %s15_s10, %s183_s11  ;;  %p189_p2 = scmp.lt.s32.totalorder %s183_s11, %s183_s11 }
   0x6   :  { %p190_p3 = por %p189_p2, %p188_p1 }
   0x8   :  { %p191_p4 = pnand %p190_p3, %p184_p0 }
   0xa   :  { %194 = shalt.err (!%p191_p4)
}
   0xb   :  { %s220_s12 = smov 128   ;;  %s221_s13 = smov 8  }
   0xc   :  { %20 = dma.hbm_to_vmem [thread:$0]  %s273_s0, 256, %s15_s10, [#allocation3], %s220_s12, %s220_s12, %s221_s13  }
   0xd   :  { %215 = dma.done.wait [#allocation3], 256  }
   0xe   :  { %216 = vsyncadd [#allocation3], 4294967040  ;;  %vm34_vm0 = vcmask 1043456   ;;  %v26_v0 = vld [vmem:[#allocation2] sm:$0xff]  ;;  %v27_v1 = vld [vmem:[#allocation2 + $0x8] sm:$0xff]  ;;  %v54_v12 = vlaneseq  ;;  %v223_v36 = vmov 0  }
   0xf   :  { %v30_v2 = vcombine.high %v26_v0, %v26_v0  ;;  %v35_v3 = vsel %vm34_vm0, %v26_v0, 0.0  ;;  %v31_v4 = vcombine.high %v27_v1, %v27_v1  ;;  %v40_v6 = vsel %vm34_vm0, %v27_v1, 0.0  ;;  %v84_v35 = vld [vmem:[%s274_s1 + $0x4] sm:$0xf]  ;;  %170 = vset.pattern.permute.xlu1 %v223_v36  ;;  %169 = vset.pattern.permute.xlu0 %v223_v36  ;;  %v85_v37 = vld [vmem:[%s274_s1 + $0x8] sm:$0xf] }
  0x10   :  { %v222_v10 = vmov 839922192   ;;  %v55_v15 = vshrl.u32 %v54_v12, 7  ;;  %v83_v45 = vld [vmem:[%s274_s1] sm:$0xf]  ;;  %s224_s21 = smov [#allocation5]  }
  0x11   :  { %v36_v5 = vsel %vm34_vm0, %v30_v2, 0.0  ;;  %v41_v7 = vsel %vm34_vm0, %v31_v4, 0.0  ;;  %v52_v11 = vunpack.c.l.s4 %v222_v10  ;;  %s151_s1 = sshll.u32 %s224_s21, 4  ;;  %s152_s1 = int_to_ptr.vmem [resolvable:$true] %s151_s1 }
  0x12   :  { %v37_v8 = vadd.f32 %v36_v5, %v35_v3  ;;  %v42_v9 = vadd.f32 %v41_v7, %v40_v6  ;;  %s195_s22 = scalar_lea.vmem %s152_s1, 256  ;;  %p200_p6 = scmp.lt.s32.totalorder %s152_s1, %s152_s1 }
  0x13   :  { %v53_v14 = vunpack.c.0.s8 %v52_v11  ;;  %p196_p5 = scmp.ne.s32.totalorder %s152_s1, %s195_s22  ;;  %p201_p7 = scmp.lt.s32.totalorder %s195_s22, %s195_s22 }
  0x14   :  { %38 = vadd.xlane.f32.xlu0 %v37_v8 }
  0x15   :  { %v56_v19 = vsub.s32 %v53_v14, %v55_v15  ;;  %p202_p8 = por %p201_p7, %p200_p6 }
  0x17   :  { %p203_p9 = pnand %p202_p8, %p196_p5 }
  0x18   :  { %43 = vadd.xlane.f32.xlu0 %v42_v9 }
  0x9d   :  { %v39_v13 = vpop.xlane.xlu0 %38 }
  0x9e   :  { %v45_v17 = vsel %vm34_vm0, %v39_v13, 0.0 }
  0xa1   :  { %v44_v16 = vpop.xlane.xlu0 %43 }
  0xa2   :  { %v46_v18 = vsel %vm34_vm0, %v44_v16, 0.0 }
  0xa3   :  { %v47_v20 = vadd.f32 %v46_v18, %v45_v17 }
  0xa5   :  { %v49_v21 = vmul.f32 0.001953125, %v47_v20 }
  0xa7   :  { %v57_v22 = vrot.slane %v49_v21, %v56_v19 }
  0xa9   :  { %v60_v23 = vsub.f32 %v27_v1, %v57_v22  ;;  %v59_v24 = vsub.f32 %v26_v0, %v57_v22 }
  0xab   :  { %v61_v25 = vmul.f32 %v59_v24, %v59_v24  ;;  %v62_v26 = vmul.f32 %v60_v23, %v60_v23 }
  0xad   :  { %v65_v27 = vcombine.high %v61_v25, %v61_v25  ;;  %v66_v28 = vcombine.high %v62_v26, %v62_v26  ;;  %v69_v29 = vsel %vm34_vm0, %v61_v25, 0.0  ;;  %v74_v33 = vsel %vm34_vm0, %v62_v26, 0.0 }
  0xaf   :  { %v70_v30 = vsel %vm34_vm0, %v65_v27, 0.0  ;;  %v75_v32 = vsel %vm34_vm0, %v66_v28, 0.0 }
  0xb0   :  { %v71_v31 = vadd.f32 %v70_v30, %v69_v29  ;;  %v76_v34 = vadd.f32 %v75_v32, %v74_v33 }
  0xb2   :  { %72 = vadd.xlane.f32.xlu1 %v71_v31 }
  0xb6   :  { %77 = vadd.xlane.f32.xlu1 %v76_v34 }
  0xc7   :  { %105 = vperm.xlu1 %170, %v84_v35  }
  0xcb   :  { %121 = vperm.xlu1 %170, %v85_v37  }
 0x13b   :  { %v73_v38 = vpop.xlane.xlu1 %72 }
 0x13c   :  { %v79_v40 = vsel %vm34_vm0, %v73_v38, 0.0 }
 0x13f   :  { %v78_v39 = vpop.xlane.xlu1 %77 }
 0x140   :  { %v80_v41 = vsel %vm34_vm0, %v78_v39, 0.0 }
 0x141   :  { %v81_v42 = vadd.f32 %v80_v41, %v79_v40 }
 0x143   :  { %v82_v43 = vmul.f32 0.001953125, %v81_v42  ;;  %v106_v48 = vpop.permute.xlu1 %105 }
 0x144   :  { %v113_v50 = vrot.slane %v106_v48, %v56_v19 }
 0x145   :  { %v86_v44 = vadd.f32 0.001, %v82_v43 }
 0x147   :  { %173 = vrsqrt.f32 %v86_v44  ;;  %v122_v58 = vpop.permute.xlu1 %121 }
 0x154   :  { %v174_v46 = vpop.eup %173 }
 0x155   :  { %v88_v47 = vmul.f32 %v174_v46, %v83_v45 }
 0x157   :  { %91 = vperm.xlu0 %169, %v88_v47  }
 0x1d2   :  { %v92_v49 = vpop.permute.xlu0 %91 }
 0x1d3   :  { %v99_v51 = vrot.slane %v92_v49, %v56_v19 }
 0x1d5   :  { %v101_v52 = vmul.f32 %v99_v51, %v59_v24  ;;  %v102_v53 = vmul.f32 %v99_v51, %v60_v23 }
 0x1d7   :  { %v115_v54 = vadd.f32 %v113_v50, %v101_v52  ;;  %v116_v55 = vadd.f32 %v113_v50, %v102_v53 }
 0x1d9   :  { %v126_v56 = vcombine.high %v115_v54, %v115_v54  ;;  %v127_v57 = vcombine.high %v116_v55, %v116_v55  ;;  %v130_v59 = vmul.f32 %v122_v58, %v115_v54  ;;  %v132_v61 = vmul.f32 %v122_v58, %v116_v55 }
 0x1da   :  { %vm117_vm1 = vcmp.gt.f32.partialorder %v115_v54, 0.0  ;;  %vm118_vm2 = vcmp.gt.f32.partialorder %v116_v55, 0.0 }
 0x1db   :  { %v131_v60 = vmul.f32 %v126_v56, %v122_v58  ;;  %v133_v62 = vmul.f32 %v127_v57, %v122_v58 }
 0x1dd   :  { %v138_v63 = vcombine.low %v130_v59, %v131_v60  ;;  %v139_v0 = vcombine.low %v132_v61, %v133_v62 }
 0x1df   :  { %v142_v1 = vsel %vm117_vm1, %v115_v54, %v138_v63  ;;  %v143_v2 = vsel %vm118_vm2, %v116_v55, %v139_v0 }
 0x1e0   :  { %144 = vst [vmem:[#allocation5] sm:$0xff] %v142_v1  ;;  %145 = vst [vmem:[#allocation5 + $0x8] sm:$0xff] %v143_v2 }
 0x1e1   :  { %206 = shalt.err (!%p203_p9)
}
 0x1e2   :  { %157 = dma.vmem_to_hbm [thread:$0]  %s152_s1, 256, %s275_s2, [#allocation4], %s220_s12, %s220_s12, %s221_s13  }
 0x1e3   :  { %217 = dma.done.wait [#allocation4], 256  }
 0x1e4   :  { %218 = vsyncadd [#allocation4], 4294967040 }
 0x1e5   :  { %161 = vsyncpa [#allocation3], 1 }
 0x1e6   :  { %162 = vsyncpa [#allocation4], 1 }

</bundles_post_ra>
